<compile_context>
chip_gen: v7x
topology: tpu7x:2x2x1
jax: 0.10.0
libtpu: 0.0.40
codegen_flags: <defaults>
</compile_context>

<pallas_src>
import jax
import jax.numpy as jnp
from jax.experimental import pallas as pl
from jax.experimental.pallas import tpu as pltpu

_EPS = 1e-5


def _attn_kernel(q_ref, ctx_ref, mask_ref, wq_ref, wc_ref, bc_ref, wo_ref,
                 bo_ref, out_ref, wexp_ref, denom_ref, acc_ref, s_ref):
    t = pl.program_id(1)

    @pl.when(t == 0)
    def _init():
        acc_ref[...] = jnp.zeros_like(acc_ref)
        s_ref[...] = jnp.zeros_like(s_ref)

    ctx = ctx_ref[0]                                          # (tT, C)

    # linear_q (no bias): (1, Q) @ (Q, Hh) -> (1, Hh). Tiny; recomputed per tile.
    res_q = jnp.dot(q_ref[0], wq_ref[...], preferred_element_type=jnp.float32)
    # linear_c: (tT, C) @ (C, Hh) -> (tT, Hh); the dominant MXU matmul.
    res_c = jnp.dot(ctx, wc_ref[...], preferred_element_type=jnp.float32)

    tmp = jnp.tanh(res_c + res_q + bc_ref[...].astype(jnp.float32))   # (tT, Hh)

    # linear_o: contract over Hh (lane axis, XLU reduce) -> (tT, 1), plus bias.
    logit = jnp.sum(tmp * wo_ref[...].astype(jnp.float32), axis=-1, keepdims=True)
    logit = logit + bo_ref[...].astype(jnp.float32)

    wexp = mask_ref[0].astype(jnp.float32) * jnp.exp(logit)           # (tT, 1)

    wexp_ref[0] = wexp.astype(wexp_ref.dtype)
    s_ref[...] += jnp.sum(wexp, axis=0, keepdims=True)                # (1, 1)
    # Weighted context accumulation: sum_t wexp[t] * ctx[t, :] -> (1, C).
    acc_ref[...] += jnp.sum(wexp * ctx.astype(jnp.float32), axis=0, keepdims=True)

    @pl.when(t == pl.num_programs(1) - 1)
    def _finalize():
        denom = s_ref[...] + jnp.float32(_EPS)                        # (1, 1)
        denom_ref[0] = denom.astype(denom_ref.dtype)
        out_ref[0] = (acc_ref[...] / denom).astype(out_ref.dtype)


def _round_up(x, m):
    return ((x + m - 1) // m) * m


def _nbytes(x):
    return int(x.size) * jnp.dtype(x.dtype).itemsize


def attention_large_memory_forward(query, context, mapping_mask,
                                   wq, wc, bc, wo, bo, *, t_tile=None):
    """Pallas TPU forward for AttentionModelLargeMemory.

    query (B, Q); context (B, T, C); mapping_mask (B, T, 1) or (B, T).
    wq (Q, Hh) = linear_q.weight.T; wc (C, Hh) = linear_c.weight.T; bc (Hh,);
    wo (Hh,) = linear_o.weight.reshape(-1); bo () scalar bias.
    Returns (output (B, C), weights (B, T, 1)).
    """
    B, Q = query.shape
    _, T, C = context.shape
    Hh = wq.shape[-1]

    mask = mapping_mask.reshape(B, T, 1)

    # T tile: multiple of 8 (f32 sublane); capped so the (t_tile, C) context
    # block double-buffers comfortably even within v7x's smaller VMEM.
    if t_tile is None:
        t_tile = min(512, _round_up(T, 8))
    t_tile = max(8, _round_up(t_tile, 8))
    T_pad = _round_up(T, t_tile)
    num_t = T_pad // t_tile

    if T_pad != T:
        pad = T_pad - T
        context_p = jnp.pad(context, ((0, 0), (0, pad), (0, 0)))
        # Padded rows get mask == 0 => they contribute exactly 0 to every sum.
        mask_p = jnp.pad(mask, ((0, 0), (0, pad), (0, 0)))
    else:
        context_p, mask_p = context, mask

    q3 = query.reshape(B, 1, Q)
    bc2 = bc.reshape(1, Hh)
    wo2 = wo.reshape(1, Hh)
    bo2 = jnp.asarray(bo, jnp.float32).reshape(1, 1)

    out_dtype = context.dtype
    flops = 2 * B * (T_pad * C * Hh + num_t * Q * Hh + T_pad * Hh + T_pad * C)
    bytes_accessed = (_nbytes(q3) + _nbytes(context_p) + _nbytes(mask_p)
                      + _nbytes(wq) + _nbytes(wc) + _nbytes(bc2) + _nbytes(wo2)
                      + _nbytes(bo2)
                      + B * C * jnp.dtype(out_dtype).itemsize
                      + (B * T_pad + B) * 4)

    out3, wexp3, denom3 = pl.pallas_call(
        _attn_kernel,
        out_shape=(
            jax.ShapeDtypeStruct((B, 1, C), out_dtype),       # attended output
            jax.ShapeDtypeStruct((B, T_pad, 1), jnp.float32),  # mask * exp(logit)
            jax.ShapeDtypeStruct((B, 1, 1), jnp.float32),      # sum + eps
        ),
        grid_spec=pltpu.PrefetchScalarGridSpec(
            num_scalar_prefetch=0,
            grid=(B, num_t),
            in_specs=[
                pl.BlockSpec((1, 1, Q), lambda b, t: (b, 0, 0)),        # query
                pl.BlockSpec((1, t_tile, C), lambda b, t: (b, t, 0)),   # context
                pl.BlockSpec((1, t_tile, 1), lambda b, t: (b, t, 0)),   # mask
                pl.BlockSpec((Q, Hh), lambda b, t: (0, 0)),             # Wq
                pl.BlockSpec((C, Hh), lambda b, t: (0, 0)),             # Wc
                pl.BlockSpec((1, Hh), lambda b, t: (0, 0)),             # bc
                pl.BlockSpec((1, Hh), lambda b, t: (0, 0)),             # wo
                pl.BlockSpec((1, 1), lambda b, t: (0, 0)),              # bo
            ],
            out_specs=[
                pl.BlockSpec((1, 1, C), lambda b, t: (b, 0, 0)),        # output
                pl.BlockSpec((1, t_tile, 1), lambda b, t: (b, t, 0)),   # wexp
                pl.BlockSpec((1, 1, 1), lambda b, t: (b, 0, 0)),        # denom
            ],
            scratch_shapes=[
                pltpu.VMEM((1, C), jnp.float32),   # sum_t wexp_t * context_t
                pltpu.VMEM((1, 1), jnp.float32),   # sum_t wexp_t
            ],
        ),
        compiler_params=pltpu.CompilerParams(
            dimension_semantics=("parallel", "arbitrary"),
        ),
        cost_estimate=pl.CostEstimate(
            flops=int(flops),
            transcendentals=int(B * T_pad * (Hh + 1)),
            bytes_accessed=int(bytes_accessed),
        ),
    )(q3, context_p, mask_p, wq, wc, bc2, wo2, bo2)

    output = out3[:, 0, :]
    # TODO(synk): the final elementwise normalization of the returned `weights`
    # needs the full-T denominator, so it is applied here in the wrapper; all
    # reductions and the attended `output` are computed inside the kernel.
    weights = wexp3[:, :T, :] / denom3
    return output, weights


if __name__ == "__main__":
    B, T = 2, 13            # batch, sequence length (deliberately not a multiple of 8)
    C, Q, Hh = 32, 24, 32   # context_size, query_size, hidden_size

    key = jax.random.PRNGKey(0)
    ks = jax.random.split(key, 8)

    def rnd(k, shape, scale=1.0):
        # Round through bf16 so MXU-pass rounding cannot perturb the check.
        x = scale * jax.random.normal(k, shape, dtype=jnp.float32)
        return x.astype(jnp.bfloat16).astype(jnp.float32)

    query = rnd(ks[0], (B, Q))
    context = rnd(ks[1], (B, T, C))
    mapping_mask = (jax.random.uniform(ks[2], (B, T, 1)) < 0.7).astype(jnp.float32)

    wq = rnd(ks[3], (Q, Hh), 0.2)
    wc = rnd(ks[4], (C, Hh), 0.2)
    bc = rnd(ks[5], (Hh,), 0.2)
    wo = rnd(ks[6], (Hh,), 0.5)
    bo = rnd(ks[7], (), 0.1)

    out, weights = attention_large_memory_forward(
        query, context, mapping_mask, wq, wc, bc, wo, bo)
    out, weights = jax.block_until_ready((out, weights))

    # Pure-JAX reference mirroring the torch forward (high-precision matmuls).
    hp = jax.lax.Precision.HIGHEST
    res_q = jnp.einsum("bq,qh->bh", query, wq, precision=hp)
    res_c = jnp.einsum("btc,ch->bth", context, wc, precision=hp) + bc
    tmp = jnp.tanh(res_q[:, None, :] + res_c)
    logit = jnp.einsum("bth,h->bt", tmp, wo, precision=hp)[..., None] + bo
    wexp = mapping_mask * jnp.exp(logit)
    weights_ref = wexp / (jnp.sum(wexp, axis=1, keepdims=True) + 1e-5)
    output_ref = jnp.sum(weights_ref * context, axis=1)

    assert out.shape == (B, C) and weights.shape == (B, T, 1)
    assert jnp.allclose(out, output_ref, atol=1e-3, rtol=1e-3), \
        float(jnp.max(jnp.abs(out - output_ref)))
    assert jnp.allclose(weights, weights_ref, atol=1e-3, rtol=1e-3), \
        float(jnp.max(jnp.abs(weights - weights_ref)))

    print("KERNEL_OK")
</pallas_src>

<mosaic_0001>
module attributes {stable_mosaic.version = 11 : i64} {
  func.func @_attn_kernel(%arg0: i32, %arg1: i32, %arg2: memref<1x1x24xf32, #tpu.memory_space<vmem>>, %arg3: memref<1x16x32xf32, #tpu.memory_space<vmem>>, %arg4: memref<1x16x1xf32, #tpu.memory_space<vmem>>, %arg5: memref<24x32xf32, #tpu.memory_space<vmem>>, %arg6: memref<32x32xf32, #tpu.memory_space<vmem>>, %arg7: memref<1x32xf32, #tpu.memory_space<vmem>>, %arg8: memref<1x32xf32, #tpu.memory_space<vmem>>, %arg9: memref<1x1xf32, #tpu.memory_space<vmem>>, %arg10: memref<1x1x32xf32, #tpu.memory_space<vmem>>, %arg11: memref<1x16x1xf32, #tpu.memory_space<vmem>>, %arg12: memref<1x1x1xf32, #tpu.memory_space<vmem>>, %arg13: memref<1x32xf32, #tpu.memory_space<vmem>>, %arg14: memref<1x1xf32, #tpu.memory_space<vmem>>) attributes {dimension_semantics = [#tpu.dimension_semantics<parallel>, #tpu.dimension_semantics<arbitrary>], iteration_bounds = array<i64: 2, 1>, scalar_prefetch = 0 : i64, scratch_operands = 2 : i64, tpu.core_type = #tpu.core_type<tc>, window_params = [{transform_indices = @transform_0, window_bounds = array<i64: 1, 1, 24>}, {transform_indices = @transform_1, window_bounds = array<i64: 1, 16, 32>}, {transform_indices = @transform_2, window_bounds = array<i64: 1, 16, 1>}, {pipeline_mode = #tpu.pipeline_mode<synchronous>, transform_indices = @transform_3, window_bounds = array<i64: 24, 32>}, {pipeline_mode = #tpu.pipeline_mode<synchronous>, transform_indices = @transform_4, window_bounds = array<i64: 32, 32>}, {pipeline_mode = #tpu.pipeline_mode<synchronous>, transform_indices = @transform_5, window_bounds = array<i64: 1, 32>}, {pipeline_mode = #tpu.pipeline_mode<synchronous>, transform_indices = @transform_6, window_bounds = array<i64: 1, 32>}, {pipeline_mode = #tpu.pipeline_mode<synchronous>, transform_indices = @transform_7, window_bounds = array<i64: 1, 1>}, {transform_indices = @transform_8, window_bounds = array<i64: 1, 1, 32>}, {transform_indices = @transform_9, window_bounds = array<i64: 1, 16, 1>}, {transform_indices = @transform_10, window_bounds = array<i64: 1, 1, 1>}]} {
    %c0_i32 = arith.constant 0 : i32
    %0 = arith.cmpi eq, %arg1, %c0_i32 : i32
    %1 = arith.extui %0 : i1 to i32
    %c0_i32_0 = arith.constant 0 : i32
    %2 = arith.cmpi ne, %1, %c0_i32_0 : i32
    scf.if %2 {
      %cst_36 = arith.constant 0.000000e+00 : f32
      %47 = vector.broadcast %cst_36 : f32 to vector<1x32xf32>
      %c0_37 = arith.constant 0 : index
      %c0_38 = arith.constant 0 : index
      %48 = vector.load %arg13[%c0_37, %c0_38] : memref<1x32xf32, #tpu.memory_space<vmem>>, vector<1x32xf32>
      tpu.vector_store %arg13[%c0_37, %c0_38], %47 {strides = array<i32>} : memref<1x32xf32, #tpu.memory_space<vmem>>, vector<1x32xf32>,
      %cst_39 = arith.constant 0.000000e+00 : f32
      %49 = vector.broadcast %cst_39 : f32 to vector<1x1xf32>
      %c0_40 = arith.constant 0 : index
      %c0_41 = arith.constant 0 : index
      %50 = vector.load %arg14[%c0_40, %c0_41] : memref<1x1xf32, #tpu.memory_space<vmem>>, vector<1x1xf32>
      tpu.vector_store %arg14[%c0_40, %c0_41], %49 {strides = array<i32>} : memref<1x1xf32, #tpu.memory_space<vmem>>, vector<1x1xf32>,
    } else {
    }
    %c0 = arith.constant 0 : index
    %c0_1 = arith.constant 0 : index
    %c0_2 = arith.constant 0 : index
    %3 = vector.load %arg3[%c0, %c0_1, %c0_2] : memref<1x16x32xf32, #tpu.memory_space<vmem>>, vector<1x16x32xf32>
    %4 = vector.shape_cast %3 : vector<1x16x32xf32> to vector<16x32xf32>
    %c0_3 = arith.constant 0 : index
    %c0_4 = arith.constant 0 : index
    %c0_5 = arith.constant 0 : index
    %5 = vector.load %arg2[%c0_3, %c0_4, %c0_5] : memref<1x1x24xf32, #tpu.memory_space<vmem>>, vector<1x1x24xf32>
    %6 = vector.shape_cast %5 : vector<1x1x24xf32> to vector<1x24xf32>
    %c0_6 = arith.constant 0 : index
    %c0_7 = arith.constant 0 : index
    %7 = vector.load %arg5[%c0_6, %c0_7] : memref<24x32xf32, #tpu.memory_space<vmem>>, vector<24x32xf32>
    %cst = arith.constant dense<0.000000e+00> : vector<1x32xf32>
    %8 = tpu.matmul %6, %7, %cst {dimension_numbers = #tpu.dot_dimension_numbers<[1], [0], [0], [1], [0, 0, 1, 1], [], []>} : vector<1x24xf32>, vector<24x32xf32>, vector<1x32xf32> -> vector<1x32xf32>
    %c0_8 = arith.constant 0 : index
    %c0_9 = arith.constant 0 : index
    %9 = vector.load %arg6[%c0_8, %c0_9] : memref<32x32xf32, #tpu.memory_space<vmem>>, vector<32x32xf32>
    %cst_10 = arith.constant dense<0.000000e+00> : vector<16x32xf32>
    %10 = tpu.matmul %4, %9, %cst_10 {dimension_numbers = #tpu.dot_dimension_numbers<[1], [0], [0], [1], [0, 0, 1, 1], [], []>} : vector<16x32xf32>, vector<32x32xf32>, vector<16x32xf32> -> vector<16x32xf32>
    %11 = vector.broadcast %8 : vector<1x32xf32> to vector<16x32xf32>
    %12 = arith.addf %10, %11 : vector<16x32xf32>
    %c0_11 = arith.constant 0 : index
    %c0_12 = arith.constant 0 : index
    %13 = vector.load %arg7[%c0_11, %c0_12] : memref<1x32xf32, #tpu.memory_space<vmem>>, vector<1x32xf32>
    %14 = vector.broadcast %13 : vector<1x32xf32> to vector<16x32xf32>
    %15 = arith.addf %12, %14 : vector<16x32xf32>
    %16 = math.tanh %15 : vector<16x32xf32>
    %c0_13 = arith.constant 0 : index
    %c0_14 = arith.constant 0 : index
    %17 = vector.load %arg8[%c0_13, %c0_14] : memref<1x32xf32, #tpu.memory_space<vmem>>, vector<1x32xf32>
    %18 = vector.broadcast %17 : vector<1x32xf32> to vector<16x32xf32>
    %19 = arith.mulf %16, %18 : vector<16x32xf32>
    %cst_15 = arith.constant dense<0.000000e+00> : vector<16xf32>
    %20 = vector.multi_reduction <add>, %19, %cst_15 [1] : vector<16x32xf32> to vector<16xf32>
    %21 = vector.shape_cast %20 : vector<16xf32> to vector<16x1xf32>
    %c0_16 = arith.constant 0 : index
    %c0_17 = arith.constant 0 : index
    %22 = vector.load %arg9[%c0_16, %c0_17] : memref<1x1xf32, #tpu.memory_space<vmem>>, vector<1x1xf32>
    %23 = vector.broadcast %22 : vector<1x1xf32> to vector<16x1xf32>
    %24 = arith.addf %21, %23 : vector<16x1xf32>
    %c0_18 = arith.constant 0 : index
    %c0_19 = arith.constant 0 : index
    %c0_20 = arith.constant 0 : index
    %25 = vector.load %arg4[%c0_18, %c0_19, %c0_20] : memref<1x16x1xf32, #tpu.memory_space<vmem>>, vector<1x16x1xf32>
    %26 = vector.shape_cast %25 : vector<1x16x1xf32> to vector<16x1xf32>
    %27 = math.exp %24 : vector<16x1xf32>
    %28 = arith.mulf %26, %27 : vector<16x1xf32>
    %c0_21 = arith.constant 0 : index
    %c0_22 = arith.constant 0 : index
    %c0_23 = arith.constant 0 : index
    %29 = vector.load %arg11[%c0_21, %c0_22, %c0_23] : memref<1x16x1xf32, #tpu.memory_space<vmem>>, vector<1x16x1xf32>
    %30 = vector.shape_cast %29 : vector<1x16x1xf32> to vector<16x1xf32>
    %31 = vector.shape_cast %28 : vector<16x1xf32> to vector<1x16x1xf32>
    tpu.vector_store %arg11[%c0_21, %c0_22, %c0_23], %31 {strides = array<i32>} : memref<1x16x1xf32, #tpu.memory_space<vmem>>, vector<1x16x1xf32>,
    %c0_24 = arith.constant 0 : index
    %c0_25 = arith.constant 0 : index
    %32 = vector.load %arg14[%c0_24, %c0_25] : memref<1x1xf32, #tpu.memory_space<vmem>>, vector<1x1xf32>
    %cst_26 = arith.constant dense<0.000000e+00> : vector<1xf32>
    %33 = vector.multi_reduction <add>, %28, %cst_26 [0] : vector<16x1xf32> to vector<1xf32>
    %34 = vector.shape_cast %33 : vector<1xf32> to vector<1x1xf32>
    %35 = arith.addf %32, %34 : vector<1x1xf32>
    %c0_27 = arith.constant 0 : index
    %c0_28 = arith.constant 0 : index
    %36 = vector.load %arg14[%c0_27, %c0_28] : memref<1x1xf32, #tpu.memory_space<vmem>>, vector<1x1xf32>
    tpu.vector_store %arg14[%c0_27, %c0_28], %35 {strides = array<i32>} : memref<1x1xf32, #tpu.memory_space<vmem>>, vector<1x1xf32>,
    %c0_29 = arith.constant 0 : index
    %c0_30 = arith.constant 0 : index
    %37 = vector.load %arg13[%c0_29, %c0_30] : memref<1x32xf32, #tpu.memory_space<vmem>>, vector<1x32xf32>
    %38 = vector.broadcast %28 : vector<16x1xf32> to vector<16x32xf32>
    %39 = arith.mulf %38, %4 : vector<16x32xf32>
    %cst_31 = arith.constant dense<0.000000e+00> : vector<32xf32>
    %40 = vector.multi_reduction <add>, %39, %cst_31 [0] : vector<16x32xf32> to vector<32xf32>
    %41 = vector.shape_cast %40 : vector<32xf32> to vector<1x32xf32>
    %42 = arith.addf %37, %41 : vector<1x32xf32>
    %c0_32 = arith.constant 0 : index
    %c0_33 = arith.constant 0 : index
    %43 = vector.load %arg13[%c0_32, %c0_33] : memref<1x32xf32, #tpu.memory_space<vmem>>, vector<1x32xf32>
    tpu.vector_store %arg13[%c0_32, %c0_33], %42 {strides = array<i32>} : memref<1x32xf32, #tpu.memory_space<vmem>>, vector<1x32xf32>,
    %c0_i32_34 = arith.constant 0 : i32
    %44 = arith.cmpi eq, %arg1, %c0_i32_34 : i32
    %45 = arith.extui %44 : i1 to i32
    %c0_i32_35 = arith.constant 0 : i32
    %46 = arith.cmpi ne, %45, %c0_i32_35 : i32
    scf.if %46 {
      %c0_36 = arith.constant 0 : index
      %c0_37 = arith.constant 0 : index
      %47 = vector.load %arg14[%c0_36, %c0_37] : memref<1x1xf32, #tpu.memory_space<vmem>>, vector<1x1xf32>
      %cst_38 = arith.constant 9.99999974E-6 : f32
      %48 = vector.broadcast %cst_38 : f32 to vector<1x1xf32>
      %49 = arith.addf %47, %48 : vector<1x1xf32>
      %c0_39 = arith.constant 0 : index
      %c0_40 = arith.constant 0 : index
      %c0_41 = arith.constant 0 : index
      %50 = vector.load %arg12[%c0_39, %c0_40, %c0_41] : memref<1x1x1xf32, #tpu.memory_space<vmem>>, vector<1x1x1xf32>
      %51 = vector.shape_cast %50 : vector<1x1x1xf32> to vector<1x1xf32>
      %52 = vector.shape_cast %49 : vector<1x1xf32> to vector<1x1x1xf32>
      tpu.vector_store %arg12[%c0_39, %c0_40, %c0_41], %52 {strides = array<i32>} : memref<1x1x1xf32, #tpu.memory_space<vmem>>, vector<1x1x1xf32>,
      %c0_42 = arith.constant 0 : index
      %c0_43 = arith.constant 0 : index
      %53 = vector.load %arg13[%c0_42, %c0_43] : memref<1x32xf32, #tpu.memory_space<vmem>>, vector<1x32xf32>
      %54 = vector.broadcast %49 : vector<1x1xf32> to vector<1x32xf32>
      %55 = arith.divf %53, %54 : vector<1x32xf32>
      %c0_44 = arith.constant 0 : index
      %c0_45 = arith.constant 0 : index
      %c0_46 = arith.constant 0 : index
      %56 = vector.load %arg10[%c0_44, %c0_45, %c0_46] : memref<1x1x32xf32, #tpu.memory_space<vmem>>, vector<1x1x32xf32>
      %57 = vector.shape_cast %56 : vector<1x1x32xf32> to vector<1x32xf32>
      %58 = vector.shape_cast %55 : vector<1x32xf32> to vector<1x1x32xf32>
      tpu.vector_store %arg10[%c0_44, %c0_45, %c0_46], %58 {strides = array<i32>} : memref<1x1x32xf32, #tpu.memory_space<vmem>>, vector<1x1x32xf32>,
    } else {
    }
    return
  }
  func.func @transform_0(%arg0: i32, %arg1: i32) -> (i32, i32, i32) {
    %c0_i32 = arith.constant 0 : i32
    %c0_i32_0 = arith.constant 0 : i32
    %c0_i32_1 = arith.constant 0 : i32
    return %arg0, %c0_i32, %c0_i32_0 : i32, i32, i32
  }
  func.func @transform_1(%arg0: i32, %arg1: i32) -> (i32, i32, i32) {
    %c0_i32 = arith.constant 0 : i32
    %c0_i32_0 = arith.constant 0 : i32
    return %arg0, %arg1, %c0_i32 : i32, i32, i32
  }
  func.func @transform_2(%arg0: i32, %arg1: i32) -> (i32, i32, i32) {
    %c0_i32 = arith.constant 0 : i32
    %c0_i32_0 = arith.constant 0 : i32
    return %arg0, %arg1, %c0_i32 : i32, i32, i32
  }
  func.func @transform_3(%arg0: i32, %arg1: i32) -> (i32, i32) {
    %c0_i32 = arith.constant 0 : i32
    %c0_i32_0 = arith.constant 0 : i32
    %c0_i32_1 = arith.constant 0 : i32
    return %c0_i32, %c0_i32_0 : i32, i32
  }
  func.func @transform_4(%arg0: i32, %arg1: i32) -> (i32, i32) {
    %c0_i32 = arith.constant 0 : i32
    %c0_i32_0 = arith.constant 0 : i32
    %c0_i32_1 = arith.constant 0 : i32
    return %c0_i32, %c0_i32_0 : i32, i32
  }
  func.func @transform_5(%arg0: i32, %arg1: i32) -> (i32, i32) {
    %c0_i32 = arith.constant 0 : i32
    %c0_i32_0 = arith.constant 0 : i32
    %c0_i32_1 = arith.constant 0 : i32
    return %c0_i32, %c0_i32_0 : i32, i32
  }
  func.func @transform_6(%arg0: i32, %arg1: i32) -> (i32, i32) {
    %c0_i32 = arith.constant 0 : i32
    %c0_i32_0 = arith.constant 0 : i32
    %c0_i32_1 = arith.constant 0 : i32
    return %c0_i32, %c0_i32_0 : i32, i32
  }
  func.func @transform_7(%arg0: i32, %arg1: i32) -> (i32, i32) {
    %c0_i32 = arith.constant 0 : i32
    %c0_i32_0 = arith.constant 0 : i32
    %c0_i32_1 = arith.constant 0 : i32
    return %c0_i32, %c0_i32_0 : i32, i32
  }
  func.func @transform_8(%arg0: i32, %arg1: i32) -> (i32, i32, i32) {
    %c0_i32 = arith.constant 0 : i32
    %c0_i32_0 = arith.constant 0 : i32
    %c0_i32_1 = arith.constant 0 : i32
    return %arg0, %c0_i32, %c0_i32_0 : i32, i32, i32
  }
  func.func @transform_9(%arg0: i32, %arg1: i32) -> (i32, i32, i32) {
    %c0_i32 = arith.constant 0 : i32
    %c0_i32_0 = arith.constant 0 : i32
    return %arg0, %arg1, %c0_i32 : i32, i32, i32
  }
  func.func @transform_10(%arg0: i32, %arg1: i32) -> (i32, i32, i32) {
    %c0_i32 = arith.constant 0 : i32
    %c0_i32_0 = arith.constant 0 : i32
    %c0_i32_1 = arith.constant 0 : i32
    return %arg0, %c0_i32, %c0_i32_0 : i32, i32, i32
  }
}

</mosaic_0001>

<bundles_post_ra>
// kernel: tpu_custom_call.1
= control target key start
LH: loop header
LB: loop body
LE: loop exit
PB: predicated region body
PF: predicated region fallthrough
CT: control target
= control target key end

     0   :  { %s1601_s0 = inlined_call_operand.vmem [shape: f32[2,1,24], index: 0, kind: input, shape index: {}]   ;;  %s1602_s1 = inlined_call_operand.vmem [shape: f32[2,16,32], index: 1, kind: input, shape index: {}]   ;;  %s1603_s2 = inlined_call_operand.vmem [shape: f32[2,16,1], index: 2, kind: input, shape index: {}]   ;;  %s1604_s3 = inlined_call_operand.hbm [shape: f32[24,32], index: 3, kind: input, shape index: {}]   ;;  %s1605_s4 = inlined_call_operand.hbm [shape: f32[32,32], index: 4, kind: input, shape index: {}]   ;;  %s1606_s5 = inlined_call_operand.vmem [shape: f32[1,32], index: 5, kind: input, shape index: {}]   ;;  %s1607_s6 = inlined_call_operand.vmem [shape: f32[1,32], index: 6, kind: input, shape index: {}]   ;;  %s1608_s7 = inlined_call_operand.<no memory space> [shape: f32[1,1], index: 7, kind: input, shape index: {}]   ;;  %s1609_s8 = inlined_call_operand.hbm [shape: f32[2,1,32], index: 8, kind: output, shape index: {0}]   ;;  %s1610_s9 = inlined_call_operand.vmem [shape: f32[2,16,1], index: 9, kind: output, shape index: {1}]   ;;  %s1611_s10 = inlined_call_operand.vmem [shape: f32[2,1,1], index: 10, kind: output, shape index: {2}]  }
   0x1   :  { %v16_v0 = vstv %s1608_s7 }
   0x2   :  { %17 = vst [vmem:[#allocation4] sm:$0x1] %v16_v0 }
   0x3   :  { %18 = vsyncpa [#allocation6], 0 }
   0x4   :  { %19 = vsyncpa [#allocation9], 0 }
   0x5   :  { %20 = vsyncpa [#allocation7], 0 }
   0x6   :  { %22 = vsyncpa [#allocation7 + $0x1], 0  ;;  %s1359_s15 = smov 0   ;;  %s1361_s16 = smov 0  }
   0x7   :  { %s1363_s17 = smov 0   ;;  %s1365_s18 = smov 0  }
   0x8   :  { %s1367_s19 = smov 0   ;;  %s1369_s20 = smov 0  }
   0x9 LB: > { %1620 = sst [smem:[#allocation14_spill]] %s1278_s17  ;;  %s986_s7 = sadd.s32 4294967295, %s1290_s20   ;;  %s1290_s20 = sphi %s1369_s20, %s28_s20   ;;  %s1286_s19 = sphi %s1367_s19, %s1638_s19   ;;  %s1282_s18 = sphi %s1365_s18, %s1637_s18   ;;  %s1278_s17 = sphi %s1363_s17, %s1636_s17   ;;  %s1274_s16 = sphi %s1361_s16, %s1640_s16   ;;  %s1270_s15 = sphi %s1359_s15, %s1639_s15  }
   0xa   : > { %1621 = sst [smem:[#allocation15_spill]] %s1286_s19  ;;  %s987_s21 = sadd.s32 4294967294, %s1290_s20  }
   0xb   : > { %s40_s22 = sadd.s32 1, %s1286_s19  ;;  %s234_s23 = sadd.s32 1, %s1278_s17 }
   0xc   : > { %p42_p0 = scmp.ge.s32.totalorder %s40_s22, 2  ;;  %p244_p1 = scmp.ne.s32.totalorder %s1278_s17, %s1274_s16 }
   0xd   : > { %p245_p2 = scmp.eq.s32.totalorder %s986_s7, 1  ;;  %p250_p3 = scmp.ne.s32.totalorder %s1274_s16, %s1270_s15 }
   0xe   : > { %s1642_s22 = smov (%p42_p0, %s40_s22), 0  ;;  %p251_p5 = scmp.eq.s32.totalorder %s987_s21, 1 }
   0xf   : > { %1622 = sst [smem:[#allocation16_spill]] %s1642_s22  ;;  %p1399_p4 = por %p245_p2, %p244_p1 }
  0x10   : > { %s231_s25 = ssub.s32 %s1286_s19, %s1642_s22  ;;  %p988_p6 = scmp.ge.s32.totalorder %s1290_s20, 1 }
  0x11   : > { %s1623_s24 = scalar_select %p1399_p4, 1, 0 }
  0x12   : > { %p232_p7 = scmp.eq.s32.totalorder %s231_s25, 0  ;;  %p1406_p8 = por %p251_p5, %p250_p3 }
  0x13   : > { %p312_p9 = scmp.lt.s32.totalorder %s1290_s20, 3  ;;  %p1418_p11 = scmp.eq.s32.totalorder %s986_s7, 0 }
  0x14   : > { %s1624_s26 = scalar_select %p1406_p8, 1, 0 }
  0x15   : > { %s1412_s27 = scalar_select %p232_p7, %s1278_s17, %s234_s23  }
  0x16   : > { %1625 = sst [smem:[#allocation17_spill]] %s1624_s26  ;;  %p1414_p10 = pnand %p988_p6, %p312_p9 }
  0x17   : > { %1626 = sst [smem:[#allocation18_spill]] %s1412_s27  ;;  %s1292_s30 = smov [#allocation5]  }
  0x18   : > { %s1627_s28 = scalar_select %p1414_p10, 1, 0 }
  0x19   : > { %s1628_s29 = scalar_select %p1418_p11, 1, 0 }
  0x1a   : > { %p1064_p12 = pneg %p1414_p10  ;;  %s324_s11 = sshll.u32 %s1292_s30, 4  ;;  %s325_s11 = int_to_ptr.vmem [resolvable:$true] %s324_s11 }
  0x1b   : > { %s1293_s13 = smov [#allocation8]   ;;  %s1148_s23 = scalar_lea.hbm %s1604_s3, 384 }
  0x1c   : > { %p1426_p13 = pnand %p1418_p11, %p1064_p12  ;;  %s337_s14 = sshll.u32 %s1293_s13, 4  ;;  %s1430_s14 = int_to_ptr.vmem [resolvable:$true] %s337_s14 }
  0x1d   : > { %p1149_p0 = scmp.ne.s32.totalorder %s1604_s3, %s1148_s23  ;;  %p1155_p5 = scmp.lt.u32.totalorder %s1148_s23, %s1604_s3 }
  0x1e   : > { %p1150_p1 = pneg %p1426_p13 }
  0x20   : > { %p1151_p2 = pnand %p1150_p1, %p1149_p0 }
  0x22   : > { %p1152_p3 = pneg %p1151_p2 }
  0x24   : > { %p1157_p6 = pnand %p1155_p5, %p1152_p3 }
  0x26   : > { %1160 = shalt.err (!%p1157_p6)
}
  0x27   : > { %s1161_s13 = scalar_lea.vmem %s325_s11, 384  ;;  %p1169_p8 = scmp.lt.s32.totalorder %s325_s11, %s325_s11 }
  0x28   : > { %p1162_p7 = scmp.ne.s32.totalorder %s325_s11, %s1161_s13  ;;  %p1170_p4 = scmp.lt.s32.totalorder %s1161_s13, %s1161_s13 }
  0x2a   : > { %p1164_p9 = pnand %p1162_p7, %p1150_p1  ;;  %p1171_p11 = por %p1170_p4, %p1169_p8 }
  0x2c   : > { %p1165_p12 = pneg %p1164_p9 }
  0x2e   : > { %p1172_p10 = pnand %p1171_p11, %p1165_p12 }
  0x30   : > { %1175 = shalt.err (!%p1172_p10)
}
  0x31   : > { %s1294_s22 = smov 128   ;;  %s1295_s7 = smov 8  }
  0x32   : > { %1067 = dma.hbm_to_vmem [thread:$0]  (!%p1426_p13), %s1604_s3, 384, %s325_s11, [#allocation6], %s1294_s22, %s1294_s22, %s1295_s7  }
  0x33   : > { %s1176_s30 = scalar_lea.hbm %s1605_s4, 512 }
  0x34   : > { %p1177_p0 = scmp.ne.s32.totalorder %s1605_s4, %s1176_s30  ;;  %p1183_p10 = scmp.lt.u32.totalorder %s1176_s30, %s1605_s4 }
  0x36   : > { %p1179_p4 = pnand %p1177_p0, %p1150_p1 }
  0x38   : > { %p1180_p8 = pneg %p1179_p4 }
  0x3a   : > { %p1185_p11 = pnand %p1183_p10, %p1180_p8 }
  0x3c   : > { %1188 = shalt.err (!%p1185_p11)
}
  0x3d   : > { %s1189_s11 = scalar_lea.vmem %s1430_s14, 512  ;;  %p1197_p6 = scmp.lt.s32.totalorder %s1430_s14, %s1430_s14 }
  0x3e   : > { %p1190_p2 = scmp.ne.s32.totalorder %s1430_s14, %s1189_s11  ;;  %p1198_p7 = scmp.lt.s32.totalorder %s1189_s11, %s1189_s11 }
  0x40   : > { %p1192_p3 = pnand %p1190_p2, %p1150_p1  ;;  %p1199_p9 = por %p1198_p7, %p1197_p6 }
  0x42   : > { %p1193_p5 = pneg %p1192_p3 }
  0x44   : > { %p1200_p12 = pnand %p1199_p9, %p1193_p5 }
  0x46   : > { %1203 = shalt.err (!%p1200_p12)
}
  0x47   : > { %1070 = dma.hbm_to_vmem [thread:$0]  (!%p1426_p13), %s1605_s4, 512, %s1430_s14, [#allocation9], %s1294_s22, %s1294_s22, %s1295_s7  }
  0x48   : > { %p1630_p0 = scmp.ne.s32.totalorder %s1627_s28, 0 }
  0x49   : > { %p1631_p4 = scmp.ne.s32.totalorder (!%p1630_p0), %s1628_s29, 0 }
  0x4a   : > { %394 = sbr.rel (%p1630_p0) target bundleno = 674 (0x2a2), region = 52 }
  0x51   : > { %1257 = dma.done.wait (%p1631_p4), [#allocation6], 384  }
  0x52   : > { %1259 = vsyncadd (%p1631_p4), [#allocation6], 4294966912 }
  0x53   : > { %1261 = dma.done.wait (%p1631_p4), [#allocation9], 512  }
  0x54   : > { %1263 = vsyncadd (%p1631_p4), [#allocation9], 4294966784  ;;  %vm503_vm0 = vcmask 253952   ;;  %vm505_vm1 = vcmask 0   ;;  %v1296_v1 = vmov 0.0|0.0   ;;  %v1297_v2 = vmov 0.0  }
  0x55   : > { %1043 = vmatprep.subr.bf16.mxu0 %v1296_v1  ;;  %504 = vst.msk [vmem:[#allocation2] sm:$0x1] %vm503_vm0, %v1297_v2  ;;  %p463_p13 = scmp.lt.s32.totalorder %s1282_s18, 1  ;;  %vm1298_vm2 = vmmov 0   ;;  %v587_v3 = vld [vmem:[#allocation8] sm:$0xff]  ;;  %v588_v4 = vld [vmem:[#allocation8 + $0x8] sm:$0xff]  ;;  %v591_v16 = vlaneseq }
  0x56   : > { %506 = vst.msk [vmem:[#allocation3] sm:$0x1] %vm505_vm1, %v1297_v2  ;;  %1029 = vmatprep.mubr.msk.f32.mxu0 %vm1298_vm2, %v1297_v2  ;;  %v510_v5 = vld [vmem:[#allocation5] sm:$0xff]  ;;  %vm595_vm3 = vcmask 261120   ;;  %v1046_v6 = vpack.c.bf16 %v588_v4, %v587_v3  ;;  %v511_v7 = vld [vmem:[#allocation5 + $0x8] sm:$0xff]  ;;  %v590_v9 = vld [vmem:[#allocation8 + $0x18] sm:$0xff] }
  0x57   : > { %s1493_s27 = scalar_select %p463_p13, %s1282_s18, 1  ;;  %v589_v8 = vld [vmem:[#allocation8 + $0x10] sm:$0xff]  ;;  %v1044_v10 = vpack.c.bf16 %v511_v7, %v510_v5  ;;  %v512_v13 = vld [vmem:[#allocation5 + $0x10] sm:$0xff]  ;;  %vm513_vm4 = vcmask 195584   ;;  %v1514_v17 = vshrl.u32 %v591_v16, 7  ;;  %v1299_v36 = vmov 0  }
  0x58   : > { %v1050_v11 = vpack.c.bf16 %v590_v9, %v589_v8  ;;  %1047 = vmatprep.subr.bf16.mxu1 %v1046_v6  ;;  %v1004_v23 = vld [vmem:[%s1606_s5] ss:$0 sm:$0xff]  ;;  %1136 = vset.pattern.permute.xlu1 %v1299_v36  ;;  %v1006_v37 = vld [vmem:[#allocation4] ss:$0 sm:$0xff]  ;;  %vm720_vm5 = vcmask 7168   ;;  %s1007_s7 = sshll.u32 %s1282_s18, 4 }
  0x59   : > { %s1496_s28 = sshll.u32 %s1493_s27, 4  ;;  %s465_s19 = scalar_lea.vmem %s1601_s0, %s1493_s27  ;;  %1045 = vmatpush3.bf16.msra.mxu0 %v1044_v10  ;;  %1049 = vmatpush3.bf16.msra.mxu1 %v1046_v6  ;;  %v593_v18 = vsub.s32 0, %v1514_v17  ;;  %v1005_v29 = vld [vmem:[%s1607_s6] ss:$0 sm:$0xff] }
  0x5a   : > { %s474_s14 = scalar_lea.vmem %s1602_s1, %s1496_s28  ;;  %1027 = vmatprep.subr.mxu0 %v1297_v2  ;;  %1051 = vmatprep.subr.bf16.mxu1 %v1050_v11  ;;  %v509_v14 = vld [vmem:[%s465_s19] sm:$0x1]  ;;  %s484_s17 = scalar_lea.vmem %s1603_s2, %s1496_s28 }
  0x5b   : > { %v1502_v12 = vld [vmem:[%s474_s14] sm:$0xff]  ;;  %v1510_v15 = vld [vmem:[%s474_s14 + $0x8] sm:$0xff]  ;;  %1137 = vset.pattern.permute.xlu0 %v1299_v36  ;;  %s494_s12 = scalar_lea.vmem %s1610_s9, %s1496_s28  ;;  %s498_s22 = scalar_lea.vmem %s1611_s10, %s1493_s27 }
  0x5c   : > { %1040 = vmatprep.mubr.msk.f32.mxu1 %vm595_vm3, %v1502_v12  ;;  %v712_v44 = vld [vmem:[%s484_s17] sm:$0xff]  ;;  %v713_v47 = vld [vmem:[%s484_s17 + $0x8] sm:$0xff]  ;;  %s445_s27 = sand.u32 1, %s1274_s16   ;;  %s1553_s30 = scalar_lea.hbm %s1609_s8, %s1007_s7 }
  0x5d   : > { %1028 = vmatpush3.msra.mxu0 %v512_v13  ;;  %1053 = vmatpush3.bf16.msra.mxu1 %v1050_v11  ;;  %v723_v58 = vld [vmem:[#allocation3] sm:$0x1]  ;;  %v736_v11 = vld [vmem:[#allocation2] sm:$0x1]  ;;  %s446_s19 = scalar_lea.vmem [#allocation10], %s445_s27  ;;  %s781_s13 = scalar_lea.sflag [#allocation7], %s445_s27 }
  0x5e   : > { %1030 = vmatmul.mubr.msk.f32.vlgmr.msra.gmra.mrb[0].mxu0 %vm513_vm4, %v509_v14  ;;  %s805_s21 = sshll.u32 %s446_s19, 4  ;;  %p1632_p8 = scmp.ne.s32.totalorder %s1623_s24, 0  ;;  %s1555_s21 = int_to_ptr.vmem [resolvable:$true] %s805_s21 }
  0x5f   : > { %s1204_s11 = scalar_lea.vmem %s1555_s21, 16  ;;  %s1300_s18 = smov [#allocation10]  }
  0x60   : > { %1041 = vmatmul.mubr.msk.f32.vlgmr.msra.gmra.mrb[0].mxu1 %vm595_vm3, %v1510_v15  ;;  %p1205_p1 = scmp.ne.s32.totalorder %s1555_s21, %s1204_s11  ;;  %s1208_s17 = sshll.u32 %s1300_s18, 4  ;;  %s1209_s17 = int_to_ptr.vmem [resolvable:$false] %s1208_s17 }
  0x61   : > { %s1210_s26 = scalar_lea.vmem %s1209_s17, 32  ;;  %p1211_p2 = scmp.lt.s32.totalorder %s1555_s21, %s1209_s17 }
  0x62   : > { %p1206_p10 = pnand %p1205_p1, %p1632_p8  ;;  %p1212_p3 = scmp.lt.s32.totalorder %s1210_s26, %s1204_s11 }
  0x64   : > { %p1207_p11 = pneg %p1206_p10  ;;  %p1213_p5 = por %p1212_p3, %p1211_p2 }
  0x66   : > { %p1214_p6 = pnand %p1213_p5, %p1207_p11 }
 0x131   : > { %v583_v19 = vpop.f32.mrb[0].mxu0 }
 0x132   : > { %v594_v20 = vrot.slane %v583_v19, %v593_v18  ;;  %v1031_v21 = vpop.f32.mrb[1].mxu0 }
 0x133   : > { %v1042_v22 = vpop.f32.mrb[0].mxu1 }
 0x134   : > { %v674_v24 = vadd.f32 %v1042_v22, %v594_v20  ;;  %v668_v25 = vpop.f32.mrb[1].mxu1 }
 0x135   : > { %v669_v26 = vadd.f32 %v668_v25, %v594_v20 }
 0x136   : > { %v685_v27 = vadd.f32 %v1004_v23, %v674_v24 }
 0x137   : > { %v684_v28 = vadd.f32 %v1004_v23, %v669_v26 }
 0x138   : > { %1138 = vtanh.f32 %v685_v27 }
 0x139   : > { %1140 = vtanh.f32 %v684_v28 }
 0x142   : > { %v1139_v30 = vpop.eup %1138 }
 0x143   : > { %v1141_v31 = vpop.eup %1140  ;;  %v696_v34 = vmul.f32 %v1139_v30, %v1005_v29 }
 0x144   : > { %v695_v32 = vmul.f32 %v1141_v31, %v1005_v29 }
 0x145   : > { %v700_v35 = vsel %vm595_vm3, %v696_v34, 0.0 }
 0x146   : > { %v697_v33 = vsel %vm595_vm3, %v695_v32, 0.0 }
 0x147   : > { %698 = vadd.xlane.f32.xlu0 %v697_v33 }
 0x14b   : > { %701 = vadd.xlane.f32.xlu0 %v700_v35 }
 0x1d4   : > { %v699_v38 = vpop.xlane.xlu0 %698 }
 0x1d5   : > { %v710_v39 = vadd.f32 %v1006_v37, %v699_v38 }
 0x1d7   : > { %v714_v40 = vmul.f32 1.442695, %v710_v39 }
 0x1d8   : > { %v702_v41 = vpop.xlane.xlu0 %701 }
 0x1d9   : > { %1142 = vpow2.f32 %v714_v40  ;;  %v711_v42 = vadd.f32 %v1006_v37, %v702_v41 }
 0x1db   : > { %v716_v43 = vmul.f32 1.442695, %v711_v42 }
 0x1dd   : > { %1144 = vpow2.f32 %v716_v43 }
 0x1e3   : > { %v1143_v45 = vpop.eup %1142 }
 0x1e4   : > { %v718_v46 = vmul.f32 %v1143_v45, %v712_v44 }
 0x1e6   : > { %739 = vperm.xlu1 %1136, %v718_v46   ;;  %721 = vst.msk [vmem:[%s494_s12] sm:$0xff] %vm720_vm5, %v718_v46  ;;  %v724_v50 = vsel %vm720_vm5, %v718_v46, 0.0 }
 0x1e7   : > { %v1145_v48 = vpop.eup %1144 }
 0x1e8   : > { %v719_v49 = vmul.f32 %v1145_v48, %v713_v47 }
 0x1ea   : > { %744 = vperm.xlu1 %1136, %v719_v49   ;;  %722 = vst.msk [vmem:[%s494_s12 + $0x8] sm:$0xff] %vm720_vm5, %v719_v49  ;;  %v725_v51 = vsel %vm720_vm5, %v719_v49, 0.0 }
 0x1eb   : > { %v726_v52 = vadd.f32 %v725_v51, %v724_v50 }
 0x1ed   : > { %v727_v53 = vrot.slane %v726_v52, 4 }
 0x1ef   : > { %v728_v54 = vadd.f32 %v727_v53, %v726_v52 }
 0x1f1   : > { %v729_v55 = vrot.slane %v728_v54, 2 }
 0x1f3   : > { %v730_v56 = vadd.f32 %v729_v55, %v728_v54 }
 0x1f5   : > { %v731_v57 = vrot.slane %v730_v56, 1 }
 0x1f7   : > { %v732_v59 = vadd.f32 %v731_v57, %v730_v56 }
 0x1f9   : > { %v733_v60 = vadd.f32 %v732_v59, %v723_v58 }
 0x1fb   : > { %735 = vst.msk [vmem:[#allocation3] sm:$0x1] %vm505_vm1, %v733_v60 }
 0x202   : > { %v764_v61 = vld [vmem:[#allocation3] sm:$0x1] }
 0x203   : > { %v765_v62 = vadd.f32 1e-05, %v764_v61 }
 0x205   : > { %770 = vperm.xlu0 %1137, %v765_v62   ;;  %766 = vst.msk [vmem:[%s498_s22] sm:$0x1] %vm505_vm1, %v765_v62 }
 0x265   : > { %v740_v63 = vpop.permute.xlu1 %739 }
 0x266   : > { %v747_v0 = vmul.f32 %v740_v63, %v1502_v12 }
 0x268   : > { %v749_v3 = vsel %vm595_vm3, %v747_v0, 0.0 }
 0x269   : > { %v745_v1 = vpop.permute.xlu1 %744 }
 0x26a   : > { %v748_v2 = vmul.f32 %v745_v1, %v1510_v15 }
 0x26c   : > { %v750_v4 = vsel %vm595_vm3, %v748_v2, 0.0 }
 0x26d   : > { %v751_v5 = vadd.f32 %v750_v4, %v749_v3 }
 0x26f   : > { %v752_v6 = vrot.slane %v751_v5, 4 }
 0x271   : > { %v753_v7 = vadd.f32 %v752_v6, %v751_v5 }
 0x273   : > { %v754_v8 = vrot.slane %v753_v7, 2 }
 0x275   : > { %v755_v9 = vadd.f32 %v754_v8, %v753_v7 }
 0x277   : > { %v756_v10 = vrot.slane %v755_v9, 1 }
 0x279   : > { %v757_v13 = vadd.f32 %v756_v10, %v755_v9 }
 0x27b   : > { %v758_v14 = vadd.f32 %v757_v13, %v736_v11 }
 0x27d   : > { %760 = vst.msk [vmem:[#allocation2] sm:$0x1] %vm503_vm0, %v758_v14 }
 0x284   : > { %v771_v12 = vpop.permute.xlu0 %770  ;;  %v767_v19 = vld [vmem:[#allocation2] sm:$0x1] }
 0x285   : > { %v776_v15 = vrot.slane %v771_v12, %v593_v18 }
 0x287   : > { %1146 = vrcp.f32 %v776_v15 }
 0x291   : > { %v1147_v16 = vpop.eup %1146 }
 0x292   : > { %v778_v20 = vmul.f32 %v1147_v16, %v767_v19 }
 0x294   : > { %779 = vst.msk [vmem:[%s446_s19] sm:$0x1] %vm503_vm0, %v778_v20 }
 0x295   : > { %1217 = shalt.err (!%p1214_p6)
}
 0x296   : > { %s1218_s29 = scalar_lea.hbm %s1553_s30, 16  ;;  %s1222_s14 = scalar_lea.hbm %s1609_s8, 32 }
 0x297   : > { %p1219_p7 = scmp.ne.s32.totalorder %s1553_s30, %s1218_s29  ;;  %p1223_p0 = scmp.lt.u32.totalorder %s1553_s30, %s1609_s8 }
 0x298   : > { %p1224_p4 = scmp.lt.u32.totalorder %s1222_s14, %s1218_s29  ;;  %p1226_p1 = scmp.lt.u32.totalorder %s1218_s29, %s1553_s30 }
 0x299   : > { %p1220_p9 = pnand %p1219_p7, %p1632_p8 }
 0x29a   : > { %p1225_p13 = por %p1224_p4, %p1223_p0 }
 0x29b   : > { %p1221_p12 = pneg %p1220_p9 }
 0x29c   : > { %p1227_p10 = por %p1226_p1, %p1225_p13 }
 0x29e   : > { %p1228_p11 = pnand %p1227_p10, %p1221_p12 }
 0x2a0   : > { %1231 = shalt.err (!%p1228_p11)
}
 0x2a1   : > { %1062 = dma.vmem_to_hbm [thread:$0]  (%p1632_p8), %s1555_s21, 16, %s1553_s30, %s781_s13  }
 0x2a2 PF: > { %s1633_s7 = sld [smem:[#allocation17_spill]]  ;;  %p1079_p2 = scmp.ge.s32.totalorder %s1290_s20, 2 }
 0x2a3   : > { %s824_s19 = sand.u32 1, %s1270_s15  }
 0x2a4   : > { %s825_s23 = scalar_lea.sflag [#allocation7], %s824_s19 }
 0x2a8   : > { %p1634_p3 = scmp.ne.s32.totalorder %s1633_s7, 0 }
 0x2aa   : > { %p1072_p5 = pnand %p1079_p2, %p1634_p3 }
 0x2ac   : > { %1265 = dma.done.wait (!%p1072_p5), %s825_s23, 16  }
 0x2ad   : > { %1267 = vsyncadd (!%p1072_p5), %s825_s23, 4294967280  ;;  %s28_s20 = sadd.s32 1, %s1290_s20   ;;  %s1635_s25 = sld [smem:[#allocation14_spill]] }
 0x2ae   : > { %p25_p6 = scmp.ge.s32.totalorder %s28_s20, 4   ;;  %s1636_s17 = sld [smem:[#allocation18_spill]] }
 0x2af   : > { %s1637_s18 = sld [smem:[#allocation15_spill]]  ;;  %s1638_s19 = sld [smem:[#allocation16_spill]] }
 0x2b0   : > { %s1639_s15 = smov %s1274_s16  ;;  %27 = sbr.rel (!%p25_p6) target bundleno = 9 (0x9), region = 134 }
 0x2b3   : > { %s1640_s16 = smov %s1635_s25 }
 0x2b7   :  { %847 = vsyncpa [#allocation6], 1 }
 0x2b8   :  { %849 = vsyncpa [#allocation6 + $0x1], 1 }
 0x2b9   :  { %850 = vsyncpa [#allocation9], 1 }
 0x2ba   :  { %851 = vsyncpa [#allocation7], 1 }
 0x2bb   :  { %853 = vsyncpa [#allocation7 + $0x1], 1 }

</bundles_post_ra>
